<compile_context>
chip_gen: v7x
topology: tpu7x:2x2x1
jax: 0.10.0
libtpu: 0.0.40
codegen_flags: <defaults>
</compile_context>

<pallas_src>
import functools

import jax
import jax.numpy as jnp
import numpy as np
from jax.experimental import pallas as pl
from jax.experimental.pallas import tpu as pltpu


def q_mlp_kernel(s_ref, a_ref, w1s_ref, w1a_ref, b1_ref,
                 w2_ref, b2_ref, w3_ref, b3_ref, w4_ref, b4_ref,
                 o_ref):
    """Fused 4-layer MLP, feature-major: every tile has batch on the lane axis.

    s_ref (S, bt), a_ref (A, bt): already in the matmul dtype (wrapper cast).
    w*_ref: already in the matmul dtype.  Biases / w4 / b4 stay f32.
    Accumulation is f32 on the MXU; bias-add / ReLU run in f32 on the VPU
    (v5e has no bf16 VPU).
    """
    dt = w2_ref.dtype

    # Layer 1: split W1 replaces the torch.concat -> h1 = W1s@s + W1a@a + b1.
    h = (jnp.dot(w1s_ref[...], s_ref[...], preferred_element_type=jnp.float32)
         + jnp.dot(w1a_ref[...], a_ref[...], preferred_element_type=jnp.float32)
         + b1_ref[...])                                            # (H, bt) f32
    h = jnp.maximum(h, 0.0)

    # Layers 2 & 3 (H -> H).
    h = jnp.maximum(
        jnp.dot(w2_ref[...], h.astype(dt),
                preferred_element_type=jnp.float32) + b2_ref[...], 0.0)
    h = jnp.maximum(
        jnp.dot(w3_ref[...], h.astype(dt),
                preferred_element_type=jnp.float32) + b3_ref[...], 0.0)

    # Layer 4 (H -> 1): sublane reduction keeps the result lane-dense (1, bt)
    # with no relayout; tiny, so done in f32.
    q = jnp.sum(h * w4_ref[...], axis=0, keepdims=True) + b4_ref[...]  # (1, bt)

    # ReLU on the Q output is intentional: the original nn.Sequential ends
    # with nn.ReLU() after the last Linear.
    o_ref[...] = jnp.maximum(q, 0.0).astype(o_ref.dtype)


def _pick_batch_tile(B, requested):
    """Pick a batch tile: as large as possible, lane-aligned, and leaving at
    least 2 grid steps when B allows it (so v7x can shard across both TCs)."""
    bt = min(requested, B)
    if B // bt < 2 and B % 2 == 0 and (B // 2) % 128 == 0:
        bt = B // 2
    assert B % bt == 0, "batch must be divisible by the batch tile"
    assert bt == B or bt % 128 == 0, \
        "batch tile must be a multiple of 128 (lane-dense output) or cover the whole batch"
    return bt


@functools.partial(jax.jit, static_argnames=("batch_tile", "matmul_dtype"))
def simple_q_estimator(state, action, params, *, batch_tile=1024,
                       matmul_dtype=jnp.bfloat16):
    """Pallas-backed forward pass of SimpleQEstimator.

    state:  (B, state_size)  f32
    action: (B, action_size) f32
    params: dict with w1s (H,S), w1a (H,A), b1..b3 (H,1), w2/w3 (H,H),
            w4 (H,1), b4 (1,1)   (PyTorch (out,in) layout, W1 pre-split)
    returns (B, 1) f32
    """
    B, S = state.shape
    _, A = action.shape
    H = params["w2"].shape[0]
    bt = _pick_batch_tile(B, batch_tile)

    dt = matmul_dtype
    # Feature-major + one-time dtype cast in the wrapper: the kernel sees
    # lane-dense tiles and never re-casts weights per grid step.
    s_t = state.T.astype(dt)                      # (S, B)
    a_t = action.T.astype(dt)                     # (A, B)
    w1s = params["w1s"].astype(dt)                # (H, S)
    w1a = params["w1a"].astype(dt)                # (H, A)
    w2 = params["w2"].astype(dt)                  # (H, H)
    w3 = params["w3"].astype(dt)                  # (H, H)
    b1, b2, b3 = params["b1"], params["b2"], params["b3"]   # (H, 1) f32
    w4, b4 = params["w4"], params["b4"]                      # (H, 1), (1, 1) f32

    def rep(shape):
        # Replicated weight/bias block: constant index_map -> DMA'd once and
        # resident in VMEM; single-buffer it (double-buffering a constant
        # block is pure VMEM waste, which bites first on v7x / v5e-scoped).
        return pl.BlockSpec(shape, lambda i: (0, 0),
                            pipeline_mode=pl.Buffered(1))

    in_item = jnp.dtype(dt).itemsize
    cost = pl.CostEstimate(
        flops=2 * B * (H * (S + A) + 2 * H * H + H),
        transcendentals=0,
        bytes_accessed=(B * (S + A) * in_item                 # inputs
                        + (H * (S + A) + 2 * H * H) * in_item  # weights
                        + (3 * H + H + 1) * 4                  # biases + w4/b4
                        + B * 4),                              # output
    )

    out_row = pl.pallas_call(
        q_mlp_kernel,
        out_shape=jax.ShapeDtypeStruct((1, B), jnp.float32),
        grid_spec=pltpu.PrefetchScalarGridSpec(
            num_scalar_prefetch=0,
            grid=(B // bt,),
            in_specs=[
                pl.BlockSpec((S, bt), lambda i: (0, i)),   # state  (feature-major)
                pl.BlockSpec((A, bt), lambda i: (0, i)),   # action (feature-major)
                rep(w1s.shape), rep(w1a.shape), rep(b1.shape),
                rep(w2.shape), rep(b2.shape),
                rep(w3.shape), rep(b3.shape),
                rep(w4.shape), rep(b4.shape),
            ],
            # Lane-dense output: batch lives on the lane axis.
            out_specs=pl.BlockSpec((1, bt), lambda i: (0, i)),
        ),
        compiler_params=pltpu.CompilerParams(
            dimension_semantics=("parallel",),
            vmem_limit_bytes=48 * 1024 * 1024),
        cost_estimate=cost,
    )(s_t, a_t, w1s, w1a, b1, w2, b2, w3, b3, w4, b4)

    return out_row.reshape(B, 1)


def init_params(state_size, action_size, hidden_state_size, key):
    """nn.Linear default init (U[-1/sqrt(fan_in), +]) in PyTorch (out,in) layout,
    with W1 pre-split into the state / action halves."""
    d_in = state_size + action_size

    def uband(k, shape, fan_in):
        bound = 1.0 / np.sqrt(fan_in)
        return jax.random.uniform(k, shape, jnp.float32, -bound, bound)

    k = jax.random.split(key, 8)
    w1 = uband(k[0], (hidden_state_size, d_in), d_in)            # (H, S+A)
    b1 = uband(k[1], (hidden_state_size, 1), d_in)
    w2 = uband(k[2], (hidden_state_size, hidden_state_size), hidden_state_size)
    b2 = uband(k[3], (hidden_state_size, 1), hidden_state_size)
    w3 = uband(k[4], (hidden_state_size, hidden_state_size), hidden_state_size)
    b3 = uband(k[5], (hidden_state_size, 1), hidden_state_size)
    w4 = uband(k[6], (hidden_state_size, 1), hidden_state_size)  # (in, out=1)
    b4 = uband(k[7], (1, 1), hidden_state_size)
    return dict(w1s=w1[:, :state_size], w1a=w1[:, state_size:],
                b1=b1, w2=w2, b2=b2, w3=w3, b3=b3, w4=w4, b4=b4)


def reference_forward(state, action, p):
    """Pure-JAX f32 reference, written exactly as the torch module computes it."""
    x = jnp.concatenate([state, action], axis=-1)                 # torch.concat
    w1 = jnp.concatenate([p["w1s"], p["w1a"]], axis=1)            # (H, S+A)
    h = jax.nn.relu(x @ w1.T + p["b1"].T)
    h = jax.nn.relu(h @ p["w2"].T + p["b2"].T)
    h = jax.nn.relu(h @ p["w3"].T + p["b3"].T)
    return jax.nn.relu(h @ p["w4"] + p["b4"])                     # (B, 1)


if __name__ == "__main__":
    state_size, action_size, hidden_state_size = 16, 16, 32
    batch = 512          # -> bt=256 (multiple of 256), grid of 2 parallel steps

    key = jax.random.PRNGKey(0)
    k_state, k_action, k_params = jax.random.split(key, 3)
    state = jax.random.normal(k_state, (batch, state_size), jnp.float32)
    action = jax.random.normal(k_action, (batch, action_size), jnp.float32)
    params = init_params(state_size, action_size, hidden_state_size, k_params)

    q_ref = reference_forward(state, action, params)

    # Exactness check: f32 matmul path against the f32 reference.
    q_f32 = simple_q_estimator(state, action, params, matmul_dtype=jnp.float32)
    q_f32 = jax.block_until_ready(q_f32)
    np.testing.assert_allclose(np.asarray(q_f32), np.asarray(q_ref),
                               rtol=1e-4, atol=1e-4)

    # Performance config: bf16 inputs/weights, f32 accumulate.
    # NOTE: tolerance is atol-dominated near ReLU-zeroed Q values.
    q = simple_q_estimator(state, action, params)
    q = jax.block_until_ready(q)
    np.testing.assert_allclose(np.asarray(q), np.asarray(q_ref),
                               rtol=5e-2, atol=5e-2)

    assert q.shape == (batch, 1)
    print("KERNEL_OK")
</pallas_src>

<mosaic_0001>
module attributes {stable_mosaic.version = 11 : i64} {
  func.func @q_mlp_kernel(%arg0: i32, %arg1: memref<16x256xf32, #tpu.memory_space<vmem>>, %arg2: memref<16x256xf32, #tpu.memory_space<vmem>>, %arg3: memref<32x16xf32, #tpu.memory_space<vmem>>, %arg4: memref<32x16xf32, #tpu.memory_space<vmem>>, %arg5: memref<32x1xf32, #tpu.memory_space<vmem>>, %arg6: memref<32x32xf32, #tpu.memory_space<vmem>>, %arg7: memref<32x1xf32, #tpu.memory_space<vmem>>, %arg8: memref<32x32xf32, #tpu.memory_space<vmem>>, %arg9: memref<32x1xf32, #tpu.memory_space<vmem>>, %arg10: memref<32x1xf32, #tpu.memory_space<vmem>>, %arg11: memref<1x1xf32, #tpu.memory_space<vmem>>, %arg12: memref<1x256xf32, #tpu.memory_space<vmem>>) attributes {dimension_semantics = [#tpu.dimension_semantics<parallel>], iteration_bounds = array<i64: 2>, scalar_prefetch = 0 : i64, scratch_operands = 0 : i64, tpu.core_type = #tpu.core_type<tc>, window_params = [{transform_indices = @transform_0, window_bounds = array<i64: 16, 256>}, {transform_indices = @transform_1, window_bounds = array<i64: 16, 256>}, {pipeline_mode = #tpu.pipeline_mode<synchronous>, transform_indices = @transform_2, window_bounds = array<i64: 32, 16>}, {pipeline_mode = #tpu.pipeline_mode<synchronous>, transform_indices = @transform_3, window_bounds = array<i64: 32, 16>}, {pipeline_mode = #tpu.pipeline_mode<synchronous>, transform_indices = @transform_4, window_bounds = array<i64: 32, 1>}, {pipeline_mode = #tpu.pipeline_mode<synchronous>, transform_indices = @transform_5, window_bounds = array<i64: 32, 32>}, {pipeline_mode = #tpu.pipeline_mode<synchronous>, transform_indices = @transform_6, window_bounds = array<i64: 32, 1>}, {pipeline_mode = #tpu.pipeline_mode<synchronous>, transform_indices = @transform_7, window_bounds = array<i64: 32, 32>}, {pipeline_mode = #tpu.pipeline_mode<synchronous>, transform_indices = @transform_8, window_bounds = array<i64: 32, 1>}, {pipeline_mode = #tpu.pipeline_mode<synchronous>, transform_indices = @transform_9, window_bounds = array<i64: 32, 1>}, {pipeline_mode = #tpu.pipeline_mode<synchronous>, transform_indices = @transform_10, window_bounds = array<i64: 1, 1>}, {transform_indices = @transform_11, window_bounds = array<i64: 1, 256>}]} {
    %c0 = arith.constant 0 : index
    %c0_0 = arith.constant 0 : index
    %0 = vector.load %arg3[%c0, %c0_0] : memref<32x16xf32, #tpu.memory_space<vmem>>, vector<32x16xf32>
    %c0_1 = arith.constant 0 : index
    %c0_2 = arith.constant 0 : index
    %1 = vector.load %arg1[%c0_1, %c0_2] : memref<16x256xf32, #tpu.memory_space<vmem>>, vector<16x256xf32>
    %cst = arith.constant dense<0.000000e+00> : vector<32x256xf32>
    %2 = tpu.matmul %0, %1, %cst {dimension_numbers = #tpu.dot_dimension_numbers<[1], [0], [0], [1], [0, 0, 1, 1], [], []>} : vector<32x16xf32>, vector<16x256xf32>, vector<32x256xf32> -> vector<32x256xf32>
    %c0_3 = arith.constant 0 : index
    %c0_4 = arith.constant 0 : index
    %3 = vector.load %arg4[%c0_3, %c0_4] : memref<32x16xf32, #tpu.memory_space<vmem>>, vector<32x16xf32>
    %c0_5 = arith.constant 0 : index
    %c0_6 = arith.constant 0 : index
    %4 = vector.load %arg2[%c0_5, %c0_6] : memref<16x256xf32, #tpu.memory_space<vmem>>, vector<16x256xf32>
    %cst_7 = arith.constant dense<0.000000e+00> : vector<32x256xf32>
    %5 = tpu.matmul %3, %4, %cst_7 {dimension_numbers = #tpu.dot_dimension_numbers<[1], [0], [0], [1], [0, 0, 1, 1], [], []>} : vector<32x16xf32>, vector<16x256xf32>, vector<32x256xf32> -> vector<32x256xf32>
    %6 = arith.addf %2, %5 : vector<32x256xf32>
    %c0_8 = arith.constant 0 : index
    %c0_9 = arith.constant 0 : index
    %7 = vector.load %arg5[%c0_8, %c0_9] : memref<32x1xf32, #tpu.memory_space<vmem>>, vector<32x1xf32>
    %8 = vector.broadcast %7 : vector<32x1xf32> to vector<32x256xf32>
    %9 = arith.addf %6, %8 : vector<32x256xf32>
    %cst_10 = arith.constant 0.000000e+00 : f32
    %10 = vector.broadcast %cst_10 : f32 to vector<32x256xf32>
    %11 = arith.maximumf %9, %10 : vector<32x256xf32>
    %c0_11 = arith.constant 0 : index
    %c0_12 = arith.constant 0 : index
    %12 = vector.load %arg6[%c0_11, %c0_12] : memref<32x32xf32, #tpu.memory_space<vmem>>, vector<32x32xf32>
    %cst_13 = arith.constant dense<0.000000e+00> : vector<32x256xf32>
    %13 = tpu.matmul %12, %11, %cst_13 {dimension_numbers = #tpu.dot_dimension_numbers<[1], [0], [0], [1], [0, 0, 1, 1], [], []>} : vector<32x32xf32>, vector<32x256xf32>, vector<32x256xf32> -> vector<32x256xf32>
    %c0_14 = arith.constant 0 : index
    %c0_15 = arith.constant 0 : index
    %14 = vector.load %arg7[%c0_14, %c0_15] : memref<32x1xf32, #tpu.memory_space<vmem>>, vector<32x1xf32>
    %15 = vector.broadcast %14 : vector<32x1xf32> to vector<32x256xf32>
    %16 = arith.addf %13, %15 : vector<32x256xf32>
    %cst_16 = arith.constant 0.000000e+00 : f32
    %17 = vector.broadcast %cst_16 : f32 to vector<32x256xf32>
    %18 = arith.maximumf %16, %17 : vector<32x256xf32>
    %c0_17 = arith.constant 0 : index
    %c0_18 = arith.constant 0 : index
    %19 = vector.load %arg8[%c0_17, %c0_18] : memref<32x32xf32, #tpu.memory_space<vmem>>, vector<32x32xf32>
    %cst_19 = arith.constant dense<0.000000e+00> : vector<32x256xf32>
    %20 = tpu.matmul %19, %18, %cst_19 {dimension_numbers = #tpu.dot_dimension_numbers<[1], [0], [0], [1], [0, 0, 1, 1], [], []>} : vector<32x32xf32>, vector<32x256xf32>, vector<32x256xf32> -> vector<32x256xf32>
    %c0_20 = arith.constant 0 : index
    %c0_21 = arith.constant 0 : index
    %21 = vector.load %arg9[%c0_20, %c0_21] : memref<32x1xf32, #tpu.memory_space<vmem>>, vector<32x1xf32>
    %22 = vector.broadcast %21 : vector<32x1xf32> to vector<32x256xf32>
    %23 = arith.addf %20, %22 : vector<32x256xf32>
    %cst_22 = arith.constant 0.000000e+00 : f32
    %24 = vector.broadcast %cst_22 : f32 to vector<32x256xf32>
    %25 = arith.maximumf %23, %24 : vector<32x256xf32>
    %c0_23 = arith.constant 0 : index
    %c0_24 = arith.constant 0 : index
    %26 = vector.load %arg10[%c0_23, %c0_24] : memref<32x1xf32, #tpu.memory_space<vmem>>, vector<32x1xf32>
    %27 = vector.broadcast %26 : vector<32x1xf32> to vector<32x256xf32>
    %28 = arith.mulf %25, %27 : vector<32x256xf32>
    %cst_25 = arith.constant dense<0.000000e+00> : vector<256xf32>
    %29 = vector.multi_reduction <add>, %28, %cst_25 [0] : vector<32x256xf32> to vector<256xf32>
    %30 = vector.shape_cast %29 : vector<256xf32> to vector<1x256xf32>
    %c0_26 = arith.constant 0 : index
    %c0_27 = arith.constant 0 : index
    %31 = vector.load %arg11[%c0_26, %c0_27] : memref<1x1xf32, #tpu.memory_space<vmem>>, vector<1x1xf32>
    %32 = vector.broadcast %31 : vector<1x1xf32> to vector<1x256xf32>
    %33 = arith.addf %30, %32 : vector<1x256xf32>
    %cst_28 = arith.constant 0.000000e+00 : f32
    %34 = vector.broadcast %cst_28 : f32 to vector<1x256xf32>
    %35 = arith.maximumf %33, %34 : vector<1x256xf32>
    %c0_29 = arith.constant 0 : index
    %c0_30 = arith.constant 0 : index
    %36 = vector.load %arg12[%c0_29, %c0_30] : memref<1x256xf32, #tpu.memory_space<vmem>>, vector<1x256xf32>
    tpu.vector_store %arg12[%c0_29, %c0_30], %35 {strides = array<i32>} : memref<1x256xf32, #tpu.memory_space<vmem>>, vector<1x256xf32>,
    return
  }
  func.func @transform_0(%arg0: i32) -> (i32, i32) {
    %c0_i32 = arith.constant 0 : i32
    %c0_i32_0 = arith.constant 0 : i32
    return %c0_i32, %arg0 : i32, i32
  }
  func.func @transform_1(%arg0: i32) -> (i32, i32) {
    %c0_i32 = arith.constant 0 : i32
    %c0_i32_0 = arith.constant 0 : i32
    return %c0_i32, %arg0 : i32, i32
  }
  func.func @transform_2(%arg0: i32) -> (i32, i32) {
    %c0_i32 = arith.constant 0 : i32
    %c0_i32_0 = arith.constant 0 : i32
    %c0_i32_1 = arith.constant 0 : i32
    return %c0_i32, %c0_i32_0 : i32, i32
  }
  func.func @transform_3(%arg0: i32) -> (i32, i32) {
    %c0_i32 = arith.constant 0 : i32
    %c0_i32_0 = arith.constant 0 : i32
    %c0_i32_1 = arith.constant 0 : i32
    return %c0_i32, %c0_i32_0 : i32, i32
  }
  func.func @transform_4(%arg0: i32) -> (i32, i32) {
    %c0_i32 = arith.constant 0 : i32
    %c0_i32_0 = arith.constant 0 : i32
    %c0_i32_1 = arith.constant 0 : i32
    return %c0_i32, %c0_i32_0 : i32, i32
  }
  func.func @transform_5(%arg0: i32) -> (i32, i32) {
    %c0_i32 = arith.constant 0 : i32
    %c0_i32_0 = arith.constant 0 : i32
    %c0_i32_1 = arith.constant 0 : i32
    return %c0_i32, %c0_i32_0 : i32, i32
  }
  func.func @transform_6(%arg0: i32) -> (i32, i32) {
    %c0_i32 = arith.constant 0 : i32
    %c0_i32_0 = arith.constant 0 : i32
    %c0_i32_1 = arith.constant 0 : i32
    return %c0_i32, %c0_i32_0 : i32, i32
  }
  func.func @transform_7(%arg0: i32) -> (i32, i32) {
    %c0_i32 = arith.constant 0 : i32
    %c0_i32_0 = arith.constant 0 : i32
    %c0_i32_1 = arith.constant 0 : i32
    return %c0_i32, %c0_i32_0 : i32, i32
  }
  func.func @transform_8(%arg0: i32) -> (i32, i32) {
    %c0_i32 = arith.constant 0 : i32
    %c0_i32_0 = arith.constant 0 : i32
    %c0_i32_1 = arith.constant 0 : i32
    return %c0_i32, %c0_i32_0 : i32, i32
  }
  func.func @transform_9(%arg0: i32) -> (i32, i32) {
    %c0_i32 = arith.constant 0 : i32
    %c0_i32_0 = arith.constant 0 : i32
    %c0_i32_1 = arith.constant 0 : i32
    return %c0_i32, %c0_i32_0 : i32, i32
  }
  func.func @transform_10(%arg0: i32) -> (i32, i32) {
    %c0_i32 = arith.constant 0 : i32
    %c0_i32_0 = arith.constant 0 : i32
    %c0_i32_1 = arith.constant 0 : i32
    return %c0_i32, %c0_i32_0 : i32, i32
  }
  func.func @transform_11(%arg0: i32) -> (i32, i32) {
    %c0_i32 = arith.constant 0 : i32
    %c0_i32_0 = arith.constant 0 : i32
    return %c0_i32, %arg0 : i32, i32
  }
}

</mosaic_0001>

<bundles_post_ra>
// kernel: simple_q_estimator.1
= control target key start
LH: loop header
LB: loop body
LE: loop exit
PB: predicated region body
PF: predicated region fallthrough
CT: control target
= control target key end

     0   :  { %s1676_s0 = inlined_call_operand.vmem [shape: f32[16,512], index: 0, kind: input, shape index: {}]   ;;  %s1677_s1 = inlined_call_operand.vmem [shape: f32[16,512], index: 1, kind: input, shape index: {}]   ;;  %s1678_s2 = inlined_call_operand.vmem [shape: f32[32,16], index: 2, kind: input, shape index: {}]   ;;  %s1679_s3 = inlined_call_operand.vmem [shape: f32[32,16], index: 3, kind: input, shape index: {}]   ;;  %s1680_s4 = inlined_call_operand.vmem [shape: f32[32,1], index: 4, kind: input, shape index: {}]   ;;  %s1681_s5 = inlined_call_operand.vmem [shape: f32[32,32], index: 5, kind: input, shape index: {}]   ;;  %s1682_s6 = inlined_call_operand.vmem [shape: f32[32,1], index: 6, kind: input, shape index: {}]   ;;  %s1683_s7 = inlined_call_operand.vmem [shape: f32[32,32], index: 7, kind: input, shape index: {}]   ;;  %s1684_s8 = inlined_call_operand.vmem [shape: f32[32,1], index: 8, kind: input, shape index: {}]   ;;  %s1685_s9 = inlined_call_operand.vmem [shape: f32[32,1], index: 9, kind: input, shape index: {}]   ;;  %s1686_s10 = inlined_call_operand.<no memory space> [shape: f32[1,1], index: 10, kind: input, shape index: {}]   ;;  %s1687_s11 = inlined_call_operand.hbm [shape: f32[1,512], index: 11, kind: output, shape index: {}]  }
   0x1   :  { %v16_v0 = vstv %s1686_s10 }
   0x2   :  { %17 = vst [vmem:[#allocation2] sm:$0x1] %v16_v0 }
   0x3   :  { %18 = vsyncpa [#allocation6], 0 }
   0x4   :  { %20 = vsyncpa [#allocation6 + $0x1], 0  ;;  %s1425_s19 = smov 0   ;;  %s1427_s20 = smov 0  }
   0x5   :  { %s1429_s21 = smov 0   ;;  %s1431_s22 = smov 0  }
   0x6 LB: > { %s1180_s10 = sadd.s32 4294967295, %s1356_s22   ;;  %s1181_s23 = sadd.s32 4294967294, %s1356_s22   ;;  %s1356_s22 = sphi %s1431_s22, %s1694_s22   ;;  %s1352_s21 = sphi %s1429_s21, %s1693_s21   ;;  %s1348_s20 = sphi %s1427_s20, %s1692_s20   ;;  %s1344_s19 = sphi %s1425_s19, %s1691_s19  }
   0x7   : > { %s1448_s24 = sadd.s32 1, %s1356_s22   ;;  %s33_s25 = sadd.s32 1, %s1352_s21 }
   0x8   : > { %s30_s26 = ssub.s32 %s1356_s22, %s1448_s24  ;;  %p40_p0 = scmp.ne.s32.totalorder %s1352_s21, %s1348_s20 }
   0x9   : > { %p31_p1 = scmp.eq.s32.totalorder %s30_s26, 0  ;;  %p41_p2 = scmp.eq.s32.totalorder %s1356_s22, 0 }
   0xa   : > { %p285_p3 = scmp.eq.s32.totalorder %s1180_s10, 1  ;;  %p290_p4 = scmp.ne.s32.totalorder %s1348_s20, %s1344_s19 }
   0xb   : > { %s1461_s27 = scalar_select %p31_p1, %s1352_s21, %s33_s25  }
   0xc   : > { %p1463_p5 = por %p41_p2, %p40_p0  ;;  %p1467_p6 = por %p285_p3, %p40_p0 }
   0xd   : > { %p291_p7 = scmp.eq.s32.totalorder %s1181_s23, 1  ;;  %p1183_p9 = scmp.ge.s32.totalorder %s1356_s22, 2 }
   0xf   : > { %p1471_p8 = por %p291_p7, %p290_p4  ;;  %334 = sbr.rel (%p1183_p9) target bundleno = 36 (0x24), region = 52 }
  0x16   : > { %337 = sbr.rel (!%p1463_p5) target bundleno = 29 (0x1d), region = 56  ;;  %s339_s12 = sand.u32 (%p1463_p5), 1, %s1352_s21  }
  0x17   : > { %s1215_s13 = sshll.u32 (%p1463_p5), %s1356_s22, 4  ;;  %s1184_s14 = sshll.u32 (%p1463_p5), %s339_s12, 5 }
  0x18   : > { %s344_s17 = scalar_lea.vmem (%p1463_p5), %s1676_s0, %s1215_s13  ;;  %s341_s18 = scalar_lea.vmem (%p1463_p5), [#allocation3], %s1184_s14 }
  0x19   : > { %v357_v1 = vld [vmem:[%s344_s17] sm:$0xff] (%p1463_p5)  ;;  %v359_v2 = vld [vmem:[%s344_s17 + $0x8] sm:$0xff] (%p1463_p5) }
  0x1a   : > { %v361_v3 = vld [vmem:[%s344_s17 + $0x20] sm:$0xff] (%p1463_p5)  ;;  %358 = vst [vmem:[%s341_s18] sm:$0xff] (%p1463_p5), %v357_v1  ;;  %360 = vst [vmem:[%s341_s18 + $0x8] sm:$0xff] (%p1463_p5), %v359_v2  ;;  %v363_v4 = vld [vmem:[%s344_s17 + $0x28] sm:$0xff] (%p1463_p5) }
  0x1b   : > { %362 = vst [vmem:[%s341_s18 + $0x10] sm:$0xff] (%p1463_p5), %v361_v3  ;;  %364 = vst [vmem:[%s341_s18 + $0x18] sm:$0xff] (%p1463_p5), %v363_v4 }
  0x1d PF: > { %370 = sbr.rel (!%p1463_p5) target bundleno = 36 (0x24), region = 79  ;;  %s372_s23 = sand.u32 (%p1463_p5), 1, %s1352_s21  }
  0x1e   : > { %s1216_s25 = sshll.u32 (%p1463_p5), %s1356_s22, 4  ;;  %s1187_s26 = sshll.u32 (%p1463_p5), %s372_s23, 5 }
  0x1f   : > { %s377_s15 = scalar_lea.vmem (%p1463_p5), %s1677_s1, %s1216_s25  ;;  %s374_s14 = scalar_lea.vmem (%p1463_p5), [#allocation4], %s1187_s26 }
  0x20   : > { %v390_v5 = vld [vmem:[%s377_s15] sm:$0xff] (%p1463_p5)  ;;  %v392_v6 = vld [vmem:[%s377_s15 + $0x8] sm:$0xff] (%p1463_p5) }
  0x21   : > { %v394_v7 = vld [vmem:[%s377_s15 + $0x20] sm:$0xff] (%p1463_p5)  ;;  %391 = vst [vmem:[%s374_s14] sm:$0xff] (%p1463_p5), %v390_v5  ;;  %393 = vst [vmem:[%s374_s14 + $0x8] sm:$0xff] (%p1463_p5), %v392_v6  ;;  %v396_v8 = vld [vmem:[%s377_s15 + $0x28] sm:$0xff] (%p1463_p5) }
  0x22   : > { %395 = vst [vmem:[%s374_s14 + $0x10] sm:$0xff] (%p1463_p5), %v394_v7  ;;  %397 = vst [vmem:[%s374_s14 + $0x18] sm:$0xff] (%p1463_p5), %v396_v8 }
  0x24 PF: > { %p1190_p10 = scmp.ge.s32.totalorder %s1356_s22, 1  ;;  %p402_p11 = scmp.lt.s32.totalorder %s1356_s22, 3 }
  0x26   : > { %p403_p12 = pnand %p1190_p10, %p402_p11 }
  0x27   : > { %s1495_s28 = sand.u32 (!%p403_p12), 1, %s1348_s20   ;;  %v1358_v9 = vmov (!%p403_p12), 0.0   ;;  %v1359_v10 = vmov (!%p403_p12), 0   ;;  %v681_v11 = vld [vmem:[%s1680_s4] sm:$0xff] (!%p403_p12)  ;;  %v682_v23 = vld [vmem:[%s1680_s4 + $0x8] sm:$0xff] (!%p403_p12)  ;;  %v683_v24 = vld [vmem:[%s1680_s4 + $0x10] sm:$0xff] (!%p403_p12) }
  0x28   : > { %406 = sbr.rel (%p403_p12) target bundleno = 804 (0x324), region = 102  ;;  %s1191_s16 = sshll.u32 (!%p403_p12), %s1495_s28, 5  ;;  %555 = vmatprep.mubr.f32.mxu0 (!%p403_p12), %v1358_v9  ;;  %826 = vmatprep.mubr.f32.mxu1 (!%p403_p12), %v1358_v9  ;;  %v470_v25 = vld [vmem:[%s1679_s3] sm:$0xff] (!%p403_p12)  ;;  %vm478_vm0 = vcmask (!%p403_p12), 130048   ;;  %v684_v28 = vld [vmem:[%s1680_s4 + $0x18] sm:$0xff] (!%p403_p12)  ;;  %v471_v29 = vld [vmem:[%s1679_s3 + $0x8] sm:$0xff] (!%p403_p12) }
  0x29   : > { %1292 = vset.pattern.permute.xlu0 (!%p403_p12), %v1359_v10  ;;  %1293 = vset.pattern.permute.xlu1 (!%p403_p12), %v1359_v10  ;;  %s418_s23 = scalar_lea.vmem (!%p403_p12), [#allocation4], %s1191_s16  ;;  %s411_s25 = scalar_lea.vmem (!%p403_p12), [#allocation3], %s1191_s16  ;;  %v725_v27 = vld [vmem:[%s1682_s6] sm:$0xff] (!%p403_p12)  ;;  %v727_v30 = vld [vmem:[%s1682_s6 + $0x10] sm:$0xff] (!%p403_p12)  ;;  %v726_v31 = vld [vmem:[%s1682_s6 + $0x8] sm:$0xff] (!%p403_p12)  ;;  %vm749_vm1 = vcmask (!%p403_p12), 261120  }
  0x2a   : > { %v475_v12 = vld [vmem:[%s418_s23 + $0x8] sm:$0xff] (!%p403_p12)  ;;  %v477_v13 = vld [vmem:[%s418_s23 + $0x18] sm:$0xff] (!%p403_p12)  ;;  %v474_v14 = vld [vmem:[%s418_s23] sm:$0xff] (!%p403_p12)  ;;  %687 = vperm.xlu0 (!%p403_p12), %1292, %v681_v11   ;;  %697 = vperm.xlu1 (!%p403_p12), %1293, %v683_v24   ;;  %s1193_s13 = sshll.u32 (!%p403_p12), %s1495_s28, 1  ;;  %s1217_s15 = sshll.u32 (!%p403_p12), %s1180_s10, 5 }
  0x2b   : > { %v1218_v15 = vpack.c.bf16 (!%p403_p12), %v477_v13, %v475_v12  ;;  %v476_v16 = vld [vmem:[%s418_s23 + $0x10] sm:$0xff] (!%p403_p12)  ;;  %v467_v17 = vld [vmem:[%s411_s25 + $0x8] sm:$0xff] (!%p403_p12)  ;;  %v469_v18 = vld [vmem:[%s411_s25 + $0x18] sm:$0xff] (!%p403_p12)  ;;  %s458_s14 = scalar_lea.vmem (!%p403_p12), [#allocation5], %s1193_s13  ;;  %s1632_s23 = scalar_lea.hbm (!%p403_p12), %s1687_s11, %s1217_s15 }
  0x2c   : > { %v1220_v19 = vpack.c.bf16 (!%p403_p12), %v476_v16, %v474_v14  ;;  %v1222_v20 = vpack.c.bf16 (!%p403_p12), %v469_v18, %v467_v17  ;;  %v466_v21 = vld [vmem:[%s411_s25] sm:$0xff] (!%p403_p12)  ;;  %v468_v22 = vld [vmem:[%s411_s25 + $0x10] sm:$0xff] (!%p403_p12)  ;;  %v1046_v45 = vld [vmem:[#allocation2] sm:$0x1] (!%p403_p12)  ;;  %s1098_s17 = sshll.u32 (!%p403_p12), %s458_s14, 4  ;;  %s1084_s25 = scalar_lea.sflag (!%p403_p12), [#allocation6], %s1495_s28  ;;  %s1634_s17 = int_to_ptr.vmem [resolvable:$true] %s1098_s17 }
  0x2d   : > { %1219 = vmatprep.subr.bf16.mxu0 (!%p403_p12), %v1218_v15  ;;  %v1224_v26 = vpack.c.bf16 (!%p403_p12), %v468_v22, %v466_v21  ;;  %v472_v32 = vld [vmem:[%s1679_s3 + $0x10] sm:$0xff] (!%p403_p12)  ;;  %v863_v33 = vld [vmem:[%s1684_s8] sm:$0xff] (!%p403_p12)  ;;  %v728_v34 = vld [vmem:[%s1682_s6 + $0x18] sm:$0xff] (!%p403_p12)  ;;  %s1294_s26 = scalar_lea.vmem (!%p403_p12), %s1634_s17, 32  ;;  %s1361_s10 = smov (!%p403_p12), [#allocation5]  }
  0x2e   : > { %1221 = vmatpush1.bf16.msra.mxu0 (!%p403_p12), %v1220_v19  ;;  %692 = vperm.xlu0 (!%p403_p12), %1292, %v682_v23   ;;  %v473_v35 = vld [vmem:[%s1679_s3 + $0x18] sm:$0xff] (!%p403_p12)  ;;  %v865_v36 = vld [vmem:[%s1684_s8 + $0x10] sm:$0xff] (!%p403_p12)  ;;  %v864_v37 = vld [vmem:[%s1684_s8 + $0x8] sm:$0xff] (!%p403_p12)  ;;  %p1295_p13 = scmp.ne.s32.totalorder (!%p403_p12), %s1634_s17, %s1294_s26  ;;  %s1298_s12 = sshll.u32 (!%p403_p12), %s1361_s10, 4  ;;  %s1299_s12 = int_to_ptr.vmem [resolvable:$false] %s1298_s12 }
  0x2f   : > { %1223 = vmatprep.subr.bf16.mxu0 %v1222_v20  ;;  %702 = vperm.xlu1 %1293, %v684_v28   ;;  %v462_v38 = vld [vmem:[%s1678_s2] sm:$0xff]  ;;  %v866_v40 = vld [vmem:[%s1684_s8 + $0x18] sm:$0xff]  ;;  %v463_v41 = vld [vmem:[%s1678_s2 + $0x8] sm:$0xff]  ;;  %s1300_s13 = scalar_lea.vmem %s1299_s12, 64  ;;  %p1301_p2 = scmp.lt.s32.totalorder %s1634_s17, %s1299_s12 }
  0x30   : > { %v996_v39 = vld [vmem:[%s1685_s9] sm:$0xff]  ;;  %v998_v42 = vld [vmem:[%s1685_s9 + $0x10] sm:$0xff]  ;;  %v997_v43 = vld [vmem:[%s1685_s9 + $0x8] sm:$0xff]  ;;  %p1296_p0 = pnand %p1295_p13, %p1467_p6  ;;  %p1302_p3 = scmp.lt.s32.totalorder %s1300_s13, %s1294_s26 }
  0x31   : > { %1194 = vmatmul.mubr.msk.f32.vlgmr.msra.gmra.mrb[0].mxu0 %vm478_vm0, %v470_v25  ;;  %v464_v44 = vld [vmem:[%s1678_s2 + $0x10] sm:$0xff]  ;;  %v999_v46 = vld [vmem:[%s1685_s9 + $0x18] sm:$0xff]  ;;  %v721_v17 = vld [vmem:[%s1681_s5] sm:$0xff] }
  0x32   : > { %561 = vmatprep.mubr.f32.mxu0 %v1358_v9  ;;  %1225 = vmatpush1.bf16.msra.mxu0 %v1224_v26  ;;  %v465_v47 = vld [vmem:[%s1678_s2 + $0x18] sm:$0xff]  ;;  %v722_v18 = vld [vmem:[%s1681_s5 + $0x8] sm:$0xff]  ;;  %v723_v19 = vld [vmem:[%s1681_s5 + $0x10] sm:$0xff]  ;;  %p1297_p1 = pneg %p1296_p0  ;;  %p1303_p4 = por %p1302_p3, %p1301_p2 }
  0x33   : > { %731 = vperm.xlu0 %1292, %v725_v27   ;;  %736 = vperm.xlu1 %1293, %v726_v31   ;;  %v724_v20 = vld [vmem:[%s1681_s5 + $0x18] sm:$0xff] }
  0x34   : > { %p1304_p5 = pnand %p1303_p4, %p1297_p1 }
  0x35   : > { %1195 = vmatmul.mubr.msk.f32.gmra.mrb[2].mxu0 %vm478_vm0, %v471_v29 }
  0x36   : > { %567 = vmatprep.mubr.f32.mxu0 %v1358_v9 }
  0x37   : > { %741 = vperm.xlu0 %1292, %v727_v30   ;;  %746 = vperm.xlu1 %1293, %v728_v34  }
  0x39   : > { %1196 = vmatmul.mubr.msk.f32.gmra.mrb[4].mxu0 %vm478_vm0, %v472_v32 }
  0x3a   : > { %573 = vmatprep.mubr.f32.mxu0 %v1358_v9 }
  0x3b   : > { %869 = vperm.xlu0 %1292, %v863_v33   ;;  %874 = vperm.xlu1 %1293, %v864_v37  }
  0x3d   : > { %1197 = vmatmul.mubr.msk.f32.gmra.mrb[6].mxu0 %vm478_vm0, %v473_v35 }
  0x3e   : > { %656 = vmatprep.mubr.f32.mxu0 %v1358_v9 }
  0x3f   : > { %879 = vperm.xlu0 %1292, %v865_v36   ;;  %884 = vperm.xlu1 %1293, %v866_v40  }
  0x41   : > { %1198 = vmatmul.mubr.msk.f32.vlgmr.msra.gmra.mrb[0].mxu0 %vm478_vm0, %v462_v38 }
  0x42   : > { %662 = vmatprep.mubr.f32.mxu0 %v1358_v9 }
  0x43   : > { %1002 = vperm.xlu0 %1292, %v996_v39   ;;  %1007 = vperm.xlu1 %1293, %v997_v43  }
  0x45   : > { %1199 = vmatmul.mubr.msk.f32.gmra.mrb[2].mxu0 %vm478_vm0, %v463_v41 }
  0x46   : > { %668 = vmatprep.mubr.f32.mxu0 %v1358_v9 }
  0x47   : > { %1012 = vperm.xlu0 %1292, %v998_v42   ;;  %1017 = vperm.xlu1 %1293, %v999_v46  }
  0x49   : > { %1200 = vmatmul.mubr.msk.f32.gmra.mrb[4].mxu0 %vm478_vm0, %v464_v44 }
  0x4a   : > { %674 = vmatprep.mubr.f32.mxu0 %v1358_v9 }
  0x4b   : > { %1049 = vperm.xlu0 %1292, %v1046_v45  }
  0x4d   : > { %1201 = vmatmul.mubr.msk.f32.gmra.mrb[6].mxu0 %vm478_vm0, %v465_v47 }
  0xa9   : > { %v688_v48 = vpop.permute.xlu0 %687  ;;  %v698_v57 = vpop.permute.xlu1 %697 }
  0xad   : > { %v693_v52 = vpop.permute.xlu0 %692 }
  0xae   : > { %v703_v4 = vpop.permute.xlu1 %702 }
  0xb2   : > { %v732_v23 = vpop.permute.xlu0 %731  ;;  %v737_v25 = vpop.permute.xlu1 %736 }
  0xb6   : > { %v742_v38 = vpop.permute.xlu0 %741  ;;  %v747_v41 = vpop.permute.xlu1 %746 }
 0x114   : > { %v658_v49 = vpop.f32.mrb[0].mxu0 }
 0x115   : > { %v660_v50 = vpop.f32.mrb[1].mxu0  ;;  %v705_v51 = vadd.f32 %v688_v48, %v658_v49 }
 0x116   : > { %v706_v53 = vadd.f32 %v688_v48, %v660_v50 }
 0x117   : > { %v713_v59 = vmax.f32 %v705_v51, 0.0 }
 0x118   : > { %v664_v54 = vpop.f32.mrb[2].mxu0  ;;  %v714_v61 = vmax.f32 %v706_v53, 0.0  ;;  %v859_v53 = vld [vmem:[%s1683_s7] sm:$0xff] }
 0x119   : > { %v707_v55 = vadd.f32 %v693_v52, %v664_v54  ;;  %v666_v56 = vpop.f32.mrb[3].mxu0  ;;  %v860_v54 = vld [vmem:[%s1683_s7 + $0x8] sm:$0xff] }
 0x11a   : > { %v708_v58 = vadd.f32 %v693_v52, %v666_v56  ;;  %v862_v56 = vld [vmem:[%s1683_s7 + $0x18] sm:$0xff] }
 0x11b   : > { %v715_v60 = vmax.f32 %v707_v55, 0.0  ;;  %v861_v55 = vld [vmem:[%s1683_s7 + $0x10] sm:$0xff] }
 0x11c   : > { %v716_v62 = vmax.f32 %v708_v58, 0.0  ;;  %v670_v63 = vpop.f32.mrb[4].mxu0  ;;  %v875_v58 = vpop.permute.xlu1 %874 }
 0x11d   : > { %v672_v0 = vpop.f32.mrb[5].mxu0  ;;  %v1228_v1 = vpack.c.bf16 %v715_v60, %v713_v59  ;;  %v709_v3 = vadd.f32 %v698_v57, %v670_v63 }
 0x11e   : > { %v1226_v2 = vpack.c.bf16 %v716_v62, %v714_v61  ;;  %v710_v5 = vadd.f32 %v698_v57, %v672_v0  ;;  %v870_v57 = vpop.permute.xlu0 %869 }
 0x11f   : > { %v717_v11 = vmax.f32 %v709_v3, 0.0 }
 0x120   : > { %v676_v6 = vpop.f32.mrb[6].mxu0  ;;  %1227 = vmatprep.subr.bf16.mxu1 %v1226_v2  ;;  %v718_v13 = vmax.f32 %v710_v5, 0.0  ;;  %v885_v63 = vpop.permute.xlu1 %884 }
 0x121   : > { %v711_v7 = vadd.f32 %v703_v4, %v676_v6  ;;  %v678_v8 = vpop.f32.mrb[7].mxu0  ;;  %1229 = vmatpush1.bf16.msra.mxu1 %v1228_v1 }
 0x122   : > { %v712_v10 = vadd.f32 %v703_v4, %v678_v8  ;;  %v880_v59 = vpop.permute.xlu0 %879 }
 0x123   : > { %v719_v12 = vmax.f32 %v711_v7, 0.0 }
 0x124   : > { %v720_v14 = vmax.f32 %v712_v10, 0.0  ;;  %v1008_v8 = vpop.permute.xlu1 %1007 }
 0x125   : > { %v1232_v15 = vpack.c.bf16 %v719_v12, %v717_v11 }
 0x126   : > { %v1230_v16 = vpack.c.bf16 %v720_v14, %v718_v13  ;;  %v1003_v5 = vpop.permute.xlu0 %1002 }
 0x128   : > { %1231 = vmatprep.subr.bf16.mxu1 %v1230_v16 }
 0x129   : > { %1233 = vmatpush1.bf16.msra.mxu1 %v1232_v15 }
 0x12c   : > { %1202 = vmatmul.mubr.msk.f32.vlgmr.msra.gmra.mrb[0].mxu1 %vm749_vm1, %v721_v17 }
 0x12d   : > { %832 = vmatprep.mubr.f32.mxu1 %v1358_v9 }
 0x130   : > { %1203 = vmatmul.mubr.msk.f32.gmra.mrb[2].mxu1 %vm749_vm1, %v722_v18 }
 0x131   : > { %838 = vmatprep.mubr.f32.mxu1 %v1358_v9 }
 0x134   : > { %1204 = vmatmul.mubr.msk.f32.gmra.mrb[4].mxu1 %vm749_vm1, %v723_v19 }
 0x135   : > { %844 = vmatprep.mubr.f32.mxu1 %v1358_v9 }
 0x138   : > { %1205 = vmatmul.mubr.msk.f32.gmra.mrb[6].mxu1 %vm749_vm1, %v724_v20 }
 0x139   : > { %963 = vmatprep.mubr.f32.mxu1 %v1358_v9 }
 0x1ff   : > { %v828_v21 = vpop.f32.mrb[0].mxu1 }
 0x200   : > { %v830_v22 = vpop.f32.mrb[1].mxu1  ;;  %v829_v24 = vadd.f32 %v828_v21, %v732_v23  ;;  %v1013_v21 = vpop.permute.xlu0 %1012 }
 0x201   : > { %v831_v26 = vadd.f32 %v830_v22, %v732_v23 }
 0x202   : > { %v851_v31 = vmax.f32 %v829_v24, 0.0 }
 0x203   : > { %v834_v27 = vpop.f32.mrb[2].mxu1  ;;  %v852_v33 = vmax.f32 %v831_v26, 0.0 }
 0x204   : > { %v835_v28 = vadd.f32 %v834_v27, %v737_v25  ;;  %v836_v29 = vpop.f32.mrb[3].mxu1 }
 0x205   : > { %v837_v30 = vadd.f32 %v836_v29, %v737_v25 }
 0x206   : > { %v853_v32 = vmax.f32 %v835_v28, 0.0 }
 0x207   : > { %v854_v34 = vmax.f32 %v837_v30, 0.0  ;;  %v840_v35 = vpop.f32.mrb[4].mxu1 }
 0x208   : > { %v1236_v36 = vpack.c.bf16 %v853_v32, %v851_v31  ;;  %v842_v37 = vpop.f32.mrb[5].mxu1  ;;  %v841_v40 = vadd.f32 %v840_v35, %v742_v38  ;;  %v1018_v32 = vpop.permute.xlu1 %1017 }
 0x209   : > { %v1234_v39 = vpack.c.bf16 %v854_v34, %v852_v33  ;;  %v843_v42 = vadd.f32 %v842_v37, %v742_v38  ;;  %v1052_v37 = vlaneseq }
 0x20a   : > { %v855_v47 = vmax.f32 %v841_v40, 0.0 }
 0x20b   : > { %v846_v43 = vpop.f32.mrb[6].mxu1  ;;  %1235 = vmatprep.subr.bf16.mxu1 %v1234_v39  ;;  %v856_v49 = vmax.f32 %v843_v42, 0.0  ;;  %v1053_v42 = vshrl.u32 %v1052_v37, 7  ;;  %vm1080_vm2 = vcmp.lt.s32.totalorder %v1052_v37, 256 }
 0x20c   : > { %v847_v44 = vadd.f32 %v846_v43, %v747_v41  ;;  %v848_v45 = vpop.f32.mrb[7].mxu1  ;;  %1237 = vmatpush1.bf16.msra.mxu1 %v1236_v36 }
 0x20d   : > { %v849_v46 = vadd.f32 %v848_v45, %v747_v41 }
 0x20e   : > { %v857_v48 = vmax.f32 %v847_v44, 0.0 }
 0x20f   : > { %v858_v50 = vmax.f32 %v849_v46, 0.0 }
 0x210   : > { %v1240_v51 = vpack.c.bf16 %v857_v48, %v855_v47  ;;  %v1054_v47 = vsub.s32 0, %v1053_v42 }
 0x211   : > { %v1238_v52 = vpack.c.bf16 %v858_v50, %v856_v49  ;;  %v1360_v49 = vmov 1966171168  }
 0x212   : > { %v1064_v50 = vunpack.c.l.s4 %v1360_v49 }
 0x213   : > { %1239 = vmatprep.subr.bf16.mxu1 %v1238_v52 }
 0x214   : > { %1241 = vmatpush1.bf16.msra.mxu1 %v1240_v51  ;;  %v1050_v51 = vpop.permute.xlu0 %1049 }
 0x217   : > { %1206 = vmatmul.mubr.msk.f32.vlgmr.msra.gmra.mrb[8].mxu1 %vm749_vm1, %v859_v53 }
 0x218   : > { %969 = vmatprep.mubr.f32.mxu1 %v1358_v9 }
 0x21b   : > { %1207 = vmatmul.mubr.msk.f32.gmra.mrb[10].mxu1 %vm749_vm1, %v860_v54 }
 0x21c   : > { %975 = vmatprep.mubr.f32.mxu1 %v1358_v9 }
 0x21f   : > { %1208 = vmatmul.mubr.msk.f32.gmra.mrb[12].mxu1 %vm749_vm1, %v861_v55  ;;  %v1055_v55 = vrot.slane %v1050_v51, %v1054_v47 }
 0x220   : > { %981 = vmatprep.mubr.f32.mxu1 %v1358_v9 }
 0x223   : > { %1209 = vmatmul.mubr.msk.f32.gmra.mrb[14].mxu1 %vm749_vm1, %v862_v56 }
 0x2ea   : > { %v965_v60 = vpop.f32.mrb[8].mxu1 }
 0x2eb   : > { %v966_v61 = vadd.f32 %v965_v60, %v870_v57  ;;  %v967_v62 = vpop.f32.mrb[9].mxu1 }
 0x2ec   : > { %v968_v0 = vadd.f32 %v967_v62, %v870_v57  ;;  %v1065_v57 = vunpack.c.0.s8 %v1064_v50 }
 0x2ed   : > { %v988_v2 = vmax.f32 %v966_v61, 0.0 }
 0x2ee   : > { %v971_v1 = vpop.f32.mrb[10].mxu1  ;;  %v989_v9 = vmax.f32 %v968_v0, 0.0  ;;  %v1068_v62 = vsub.s32 %v1065_v57, %v1053_v42 }
 0x2ef   : > { %v972_v3 = vadd.f32 %v971_v1, %v875_v58  ;;  %v973_v4 = vpop.f32.mrb[11].mxu1  ;;  %v1020_v12 = vmul.f32 %v1003_v5, %v988_v2 }
 0x2f0   : > { %v974_v6 = vadd.f32 %v973_v4, %v875_v58  ;;  %v1021_v16 = vmul.f32 %v1003_v5, %v989_v9 }
 0x2f1   : > { %v990_v7 = vmax.f32 %v972_v3, 0.0 }
 0x2f2   : > { %v991_v10 = vmax.f32 %v974_v6, 0.0  ;;  %v977_v11 = vpop.f32.mrb[12].mxu1 }
 0x2f3   : > { %v1022_v13 = vmul.f32 %v1008_v8, %v990_v7  ;;  %v978_v14 = vadd.f32 %v977_v11, %v880_v59  ;;  %v979_v15 = vpop.f32.mrb[13].mxu1 }
 0x2f4   : > { %v1023_v17 = vmul.f32 %v1008_v8, %v991_v10  ;;  %v980_v18 = vadd.f32 %v979_v15, %v880_v59 }
 0x2f5   : > { %v1028_v19 = vadd.f32 %v1022_v13, %v1020_v12  ;;  %v992_v20 = vmax.f32 %v978_v14, 0.0 }
 0x2f6   : > { %v1037_v22 = vadd.f32 %v1023_v17, %v1021_v16  ;;  %v993_v23 = vmax.f32 %v980_v18, 0.0  ;;  %v983_v24 = vpop.f32.mrb[14].mxu1 }
 0x2f7   : > { %v1024_v25 = vmul.f32 %v1013_v21, %v992_v20  ;;  %v984_v26 = vadd.f32 %v983_v24, %v885_v63  ;;  %v985_v27 = vpop.f32.mrb[15].mxu1 }
 0x2f8   : > { %v1025_v28 = vmul.f32 %v1013_v21, %v993_v23  ;;  %v986_v29 = vadd.f32 %v985_v27, %v885_v63 }
 0x2f9   : > { %v1029_v30 = vadd.f32 %v1028_v19, %v1024_v25  ;;  %v994_v31 = vmax.f32 %v984_v26, 0.0 }
 0x2fa   : > { %v1038_v33 = vadd.f32 %v1037_v22, %v1025_v28  ;;  %v995_v34 = vmax.f32 %v986_v29, 0.0 }
 0x2fb   : > { %v1026_v35 = vmul.f32 %v1018_v32, %v994_v31 }
 0x2fc   : > { %v1027_v36 = vmul.f32 %v1018_v32, %v995_v34 }
 0x2fd   : > { %v1030_v38 = vadd.f32 %v1029_v30, %v1026_v35 }
 0x2fe   : > { %v1039_v39 = vadd.f32 %v1038_v33, %v1027_v36 }
 0x2ff   : > { %v1031_v40 = vrot.slane %v1030_v38, 4 }
 0x300   : > { %v1040_v41 = vrot.slane %v1039_v39, 4 }
 0x301   : > { %v1032_v43 = vadd.f32 %v1031_v40, %v1030_v38 }
 0x302   : > { %v1041_v44 = vadd.f32 %v1040_v41, %v1039_v39 }
 0x303   : > { %v1033_v45 = vrot.slane %v1032_v43, 2 }
 0x304   : > { %v1042_v46 = vrot.slane %v1041_v44, 2 }
 0x305   : > { %v1034_v48 = vadd.f32 %v1033_v45, %v1032_v43 }
 0x306   : > { %v1043_v52 = vadd.f32 %v1042_v46, %v1041_v44 }
 0x307   : > { %v1035_v53 = vrot.slane %v1034_v48, 1 }
 0x308   : > { %v1044_v54 = vrot.slane %v1043_v52, 1 }
 0x309   : > { %v1036_v56 = vadd.f32 %v1035_v53, %v1034_v48 }
 0x30a   : > { %v1045_v58 = vadd.f32 %v1044_v54, %v1043_v52 }
 0x30b   : > { %v1056_v59 = vadd.f32 %v1055_v55, %v1036_v56 }
 0x30c   : > { %v1057_v60 = vadd.f32 %v1055_v55, %v1045_v58 }
 0x30d   : > { %v1058_v61 = vmax.f32 %v1056_v59, 0.0 }
 0x30e   : > { %v1059_v63 = vmax.f32 %v1057_v60, 0.0 }
 0x310   : > { %v1062_v0 = vcombine.low %v1058_v61, %v1059_v63 }
 0x312   : > { %v1069_v1 = vrot.slane %v1062_v0, %v1068_v62 }
 0x314   : > { %v1076_v2 = vrot.slane %v1069_v1, %v1068_v62 }
 0x316   : > { %1082 = vst.msk [vmem:[%s458_s14] sm:$0x3] %vm1080_vm2, %v1076_v2 }
 0x317   : > { %1307 = shalt.err (!%p1304_p5)
}
 0x318   : > { %s1308_s28 = scalar_lea.hbm %s1632_s23, 32  ;;  %s1312_s16 = scalar_lea.hbm %s1687_s11, 64 }
 0x319   : > { %p1309_p7 = scmp.ne.s32.totalorder %s1632_s23, %s1308_s28  ;;  %p1313_p12 = scmp.lt.u32.totalorder %s1632_s23, %s1687_s11 }
 0x31a   : > { %p1314_p13 = scmp.lt.u32.totalorder %s1312_s16, %s1308_s28  ;;  %p1316_p1 = scmp.lt.u32.totalorder %s1308_s28, %s1632_s23 }
 0x31b   : > { %p1310_p10 = pnand %p1309_p7, %p1467_p6 }
 0x31c   : > { %p1315_p0 = por %p1314_p13, %p1313_p12 }
 0x31d   : > { %p1311_p11 = pneg %p1310_p10 }
 0x31e   : > { %p1317_p2 = por %p1316_p1, %p1315_p0 }
 0x320   : > { %p1318_p3 = pnand %p1317_p2, %p1311_p11 }
 0x322   : > { %1321 = shalt.err (!%p1318_p3)
}
 0x323   : > { %1250 = dma.vmem_to_hbm [thread:$0]  (%p1467_p6), %s1634_s17, 32, %s1632_s23, %s1084_s25  }
 0x324 PF: > { %s1110_s26 = sand.u32 1, %s1344_s19   ;;  %p1253_p4 = pnand %p1183_p9, %p1471_p8 }
 0x325   : > { %s1111_s12 = scalar_lea.sflag [#allocation6], %s1110_s26 }
 0x326   : > { %1339 = dma.done.wait (!%p1253_p4), %s1111_s12, 32  }
 0x327   : > { %1341 = vsyncadd (!%p1253_p4), %s1111_s12, 4294967264  ;;  %p23_p5 = scmp.ge.s32.totalorder %s1448_s24, 4   ;;  %s1691_s19 = smov %s1348_s20 }
 0x328   : > { %s1692_s20 = smov %s1352_s21  ;;  %s1693_s21 = smov %s1461_s27 }
 0x329   : > { %s1694_s22 = smov %s1448_s24  ;;  %25 = sbr.rel (!%p23_p5) target bundleno = 6 (0x6), region = 158 }
 0x330   :  { %1116 = vsyncpa [#allocation6], 1 }
 0x331   :  { %1118 = vsyncpa [#allocation6 + $0x1], 1 }

</bundles_post_ra>
